<compile_context>
chip_gen: v7x
topology: tpu7x:2x2x1
jax: 0.10.0
libtpu: 0.0.40
codegen_flags: <defaults>
</compile_context>

<pallas_src>
import functools

import jax
import jax.numpy as jnp
from jax.experimental import pallas as pl
from jax.experimental.pallas import tpu as pltpu


def _gelu_tanh(x):
    # PyTorch nn.functional.gelu(x, approximate='tanh'), computed in f32.
    c = jnp.float32(0.7978845608028654)  # sqrt(2/pi)
    return 0.5 * x * (1.0 + jnp.tanh(c * (x + 0.044715 * x * x * x)))


def siglip_mlp_kernel(x_ref, w1_ref, b1_ref, w2_ref, b2_ref, o_ref):
    # x_ref:  (tm, H)   w1_ref: (H, I)   b1_ref: (1, I)
    # w2_ref: (I, H)    b2_ref: (1, H)   o_ref:  (tm, H)
    #
    # Feed native-dtype tiles straight into the MXU; accumulate in f32.
    h = jnp.dot(x_ref[...], w1_ref[...], preferred_element_type=jnp.float32)
    h = _gelu_tanh(h + b1_ref[...].astype(jnp.float32))   # (tm, I), f32

    # Cast activations back to the weight dtype (bf16 in production) for the
    # second MXU pass; keep f32 accumulation and f32 bias add.
    y = jnp.dot(h.astype(w2_ref.dtype), w2_ref[...],
                preferred_element_type=jnp.float32)
    y = y + b2_ref[...].astype(jnp.float32)               # (tm, H), f32

    o_ref[...] = y.astype(o_ref.dtype)


def _round_up(x, m):
    return (x + m - 1) // m * m


@functools.partial(jax.jit, static_argnames=("tm",))
def siglip_mlp(hidden_states, w1, b1, w2, b2, *, tm=256):
    """hidden_states: [B, S, H];  w1: [H, I];  b1: [I];  w2: [I, H];  b2: [H]."""
    B, S, H = hidden_states.shape
    I = w1.shape[1]
    M = B * S

    # Largest sublane-aligned row tile not exceeding tm; pad M so the grid
    # divides evenly (padded rows are computed then discarded).
    tm_eff = min(tm, _round_up(M, 8))
    M_pad = _round_up(M, tm_eff)

    x2d = hidden_states.reshape(M, H)
    if M_pad != M:
        x2d = jnp.pad(x2d, ((0, M_pad - M), (0, 0)))
    b1_2d = b1.reshape(1, I)
    b2_2d = b2.reshape(1, H)

    # Weights/biases have a constant index_map -> never re-fetched: single
    # buffer them so the resident footprint is 1x, not 2x.
    resident = pl.Buffered(1)

    out = pl.pallas_call(
        siglip_mlp_kernel,
        out_shape=jax.ShapeDtypeStruct((M_pad, H), hidden_states.dtype),
        grid_spec=pltpu.PrefetchScalarGridSpec(
            num_scalar_prefetch=0,
            grid=(M_pad // tm_eff,),
            in_specs=[
                pl.BlockSpec((tm_eff, H), lambda i: (i, 0)),                    # x tile
                pl.BlockSpec((H, I), lambda i: (0, 0), pipeline_mode=resident),  # w1
                pl.BlockSpec((1, I), lambda i: (0, 0), pipeline_mode=resident),  # b1
                pl.BlockSpec((I, H), lambda i: (0, 0), pipeline_mode=resident),  # w2
                pl.BlockSpec((1, H), lambda i: (0, 0), pipeline_mode=resident),  # b2
            ],
            out_specs=pl.BlockSpec((tm_eff, H), lambda i: (i, 0)),
        ),
        compiler_params=pltpu.CompilerParams(
            dimension_semantics=("parallel",),
            vmem_limit_bytes=64 * 1024 * 1024,
        ),
    )(x2d, w1, b1_2d, w2, b2_2d)

    if M_pad != M:
        out = out[:M]
    return out.reshape(B, S, H)


def _reference_mlp(hidden_states, w1, b1, w2, b2):
    # High-precision pure-JAX reference.
    h = jnp.dot(hidden_states, w1, precision=jax.lax.Precision.HIGHEST) + b1
    h = _gelu_tanh(h)
    return jnp.dot(h, w2, precision=jax.lax.Precision.HIGHEST) + b2


if __name__ == "__main__":
    # Small, lane-dense config consistent with SiglipVisualizationConfig
    # semantics (hidden : intermediate = 1 : 4). Production SigLIP
    # (H=1152, I=4304) is handled by the same wrapper.
    batch, seq, hidden, intermediate = 2, 16, 128, 512

    key = jax.random.PRNGKey(0)
    k_x, k_w1, k_b1, k_w2, k_b2 = jax.random.split(key, 5)

    x = jax.random.normal(k_x, (batch, seq, hidden), dtype=jnp.float32)
    w1 = jax.random.uniform(k_w1, (hidden, intermediate), jnp.float32,
                            minval=-1.0, maxval=1.0) / jnp.sqrt(hidden)
    b1 = jax.random.uniform(k_b1, (intermediate,), jnp.float32,
                            minval=-1.0, maxval=1.0) / jnp.sqrt(hidden)
    w2 = jax.random.uniform(k_w2, (intermediate, hidden), jnp.float32,
                            minval=-1.0, maxval=1.0) / jnp.sqrt(intermediate)
    b2 = jax.random.uniform(k_b2, (hidden,), jnp.float32,
                            minval=-1.0, maxval=1.0) / jnp.sqrt(intermediate)

    out = siglip_mlp(x, w1, b1, w2, b2)
    jax.block_until_ready(out)

    ref = _reference_mlp(x, w1, b1, w2, b2)
    assert out.shape == (batch, seq, hidden)
    assert jnp.allclose(out, ref, atol=1e-3, rtol=1e-3), "mismatch vs reference"

    print("KERNEL_OK")
</pallas_src>

<mosaic_0001>
module attributes {stable_mosaic.version = 11 : i64} {
  func.func @siglip_mlp_kernel(%arg0: i32, %arg1: memref<32x128xf32, #tpu.memory_space<vmem>>, %arg2: memref<128x512xf32, #tpu.memory_space<vmem>>, %arg3: memref<1x512xf32, #tpu.memory_space<vmem>>, %arg4: memref<512x128xf32, #tpu.memory_space<vmem>>, %arg5: memref<1x128xf32, #tpu.memory_space<vmem>>, %arg6: memref<32x128xf32, #tpu.memory_space<vmem>>) attributes {dimension_semantics = [#tpu.dimension_semantics<parallel>], iteration_bounds = array<i64: 1>, scalar_prefetch = 0 : i64, scratch_operands = 0 : i64, tpu.core_type = #tpu.core_type<tc>, window_params = [{transform_indices = @transform_0, window_bounds = array<i64: 32, 128>}, {pipeline_mode = #tpu.pipeline_mode<synchronous>, transform_indices = @transform_1, window_bounds = array<i64: 128, 512>}, {pipeline_mode = #tpu.pipeline_mode<synchronous>, transform_indices = @transform_2, window_bounds = array<i64: 1, 512>}, {pipeline_mode = #tpu.pipeline_mode<synchronous>, transform_indices = @transform_3, window_bounds = array<i64: 512, 128>}, {pipeline_mode = #tpu.pipeline_mode<synchronous>, transform_indices = @transform_4, window_bounds = array<i64: 1, 128>}, {transform_indices = @transform_5, window_bounds = array<i64: 32, 128>}]} {
    %c0 = arith.constant 0 : index
    %c0_0 = arith.constant 0 : index
    %0 = vector.load %arg1[%c0, %c0_0] : memref<32x128xf32, #tpu.memory_space<vmem>>, vector<32x128xf32>
    %c0_1 = arith.constant 0 : index
    %c0_2 = arith.constant 0 : index
    %1 = vector.load %arg2[%c0_1, %c0_2] : memref<128x512xf32, #tpu.memory_space<vmem>>, vector<128x512xf32>
    %cst = arith.constant dense<0.000000e+00> : vector<32x512xf32>
    %2 = tpu.matmul %0, %1, %cst {dimension_numbers = #tpu.dot_dimension_numbers<[1], [0], [0], [1], [0, 0, 1, 1], [], []>} : vector<32x128xf32>, vector<128x512xf32>, vector<32x512xf32> -> vector<32x512xf32>
    %c0_3 = arith.constant 0 : index
    %c0_4 = arith.constant 0 : index
    %3 = vector.load %arg3[%c0_3, %c0_4] : memref<1x512xf32, #tpu.memory_space<vmem>>, vector<1x512xf32>
    %4 = vector.broadcast %3 : vector<1x512xf32> to vector<32x512xf32>
    %5 = arith.addf %2, %4 : vector<32x512xf32>
    %cst_5 = arith.constant 5.000000e-01 : f32
    %6 = vector.broadcast %cst_5 : f32 to vector<32x512xf32>
    %7 = arith.mulf %6, %5 : vector<32x512xf32>
    %cst_6 = arith.constant 4.471500e-02 : f32
    %8 = vector.broadcast %cst_6 : f32 to vector<32x512xf32>
    %9 = arith.mulf %8, %5 : vector<32x512xf32>
    %10 = arith.mulf %9, %5 : vector<32x512xf32>
    %11 = arith.mulf %10, %5 : vector<32x512xf32>
    %12 = arith.addf %5, %11 : vector<32x512xf32>
    %cst_7 = arith.constant 0.797884583 : f32
    %13 = vector.broadcast %cst_7 : f32 to vector<32x512xf32>
    %14 = arith.mulf %13, %12 : vector<32x512xf32>
    %15 = math.tanh %14 : vector<32x512xf32>
    %cst_8 = arith.constant 1.000000e+00 : f32
    %16 = vector.broadcast %cst_8 : f32 to vector<32x512xf32>
    %17 = arith.addf %16, %15 : vector<32x512xf32>
    %18 = arith.mulf %7, %17 : vector<32x512xf32>
    %c0_9 = arith.constant 0 : index
    %c0_10 = arith.constant 0 : index
    %19 = vector.load %arg4[%c0_9, %c0_10] : memref<512x128xf32, #tpu.memory_space<vmem>>, vector<512x128xf32>
    %cst_11 = arith.constant dense<0.000000e+00> : vector<32x128xf32>
    %20 = tpu.matmul %18, %19, %cst_11 {dimension_numbers = #tpu.dot_dimension_numbers<[1], [0], [0], [1], [0, 0, 1, 1], [], []>} : vector<32x512xf32>, vector<512x128xf32>, vector<32x128xf32> -> vector<32x128xf32>
    %c0_12 = arith.constant 0 : index
    %c0_13 = arith.constant 0 : index
    %21 = vector.load %arg5[%c0_12, %c0_13] : memref<1x128xf32, #tpu.memory_space<vmem>>, vector<1x128xf32>
    %22 = vector.broadcast %21 : vector<1x128xf32> to vector<32x128xf32>
    %23 = arith.addf %20, %22 : vector<32x128xf32>
    %c0_14 = arith.constant 0 : index
    %c0_15 = arith.constant 0 : index
    %24 = vector.load %arg6[%c0_14, %c0_15] : memref<32x128xf32, #tpu.memory_space<vmem>>, vector<32x128xf32>
    tpu.vector_store %arg6[%c0_14, %c0_15], %23 {strides = array<i32>} : memref<32x128xf32, #tpu.memory_space<vmem>>, vector<32x128xf32>,
    return
  }
  func.func @transform_0(%arg0: i32) -> (i32, i32) {
    %c0_i32 = arith.constant 0 : i32
    %c0_i32_0 = arith.constant 0 : i32
    return %arg0, %c0_i32 : i32, i32
  }
  func.func @transform_1(%arg0: i32) -> (i32, i32) {
    %c0_i32 = arith.constant 0 : i32
    %c0_i32_0 = arith.constant 0 : i32
    %c0_i32_1 = arith.constant 0 : i32
    return %c0_i32, %c0_i32_0 : i32, i32
  }
  func.func @transform_2(%arg0: i32) -> (i32, i32) {
    %c0_i32 = arith.constant 0 : i32
    %c0_i32_0 = arith.constant 0 : i32
    %c0_i32_1 = arith.constant 0 : i32
    return %c0_i32, %c0_i32_0 : i32, i32
  }
  func.func @transform_3(%arg0: i32) -> (i32, i32) {
    %c0_i32 = arith.constant 0 : i32
    %c0_i32_0 = arith.constant 0 : i32
    %c0_i32_1 = arith.constant 0 : i32
    return %c0_i32, %c0_i32_0 : i32, i32
  }
  func.func @transform_4(%arg0: i32) -> (i32, i32) {
    %c0_i32 = arith.constant 0 : i32
    %c0_i32_0 = arith.constant 0 : i32
    %c0_i32_1 = arith.constant 0 : i32
    return %c0_i32, %c0_i32_0 : i32, i32
  }
  func.func @transform_5(%arg0: i32) -> (i32, i32) {
    %c0_i32 = arith.constant 0 : i32
    %c0_i32_0 = arith.constant 0 : i32
    return %arg0, %c0_i32 : i32, i32
  }
}

</mosaic_0001>

<bundles_post_ra>
// kernel: siglip_mlp.1
= control target key start
LH: loop header
LB: loop body
LE: loop exit
PB: predicated region body
PF: predicated region fallthrough
CT: control target
= control target key end

     0   :  { %10 = vsyncpa [#allocation3], 0  ;;  %s1423_s0 = inlined_call_operand.hbm [shape: f32[32,128], index: 0, kind: input, shape index: {}]   ;;  %s1424_s1 = inlined_call_operand.hbm [shape: f32[128,512], index: 1, kind: input, shape index: {}]   ;;  %s1425_s2 = inlined_call_operand.hbm [shape: f32[1,512], index: 2, kind: input, shape index: {}]   ;;  %s1426_s3 = inlined_call_operand.hbm [shape: f32[512,128], index: 3, kind: input, shape index: {}]   ;;  %s1427_s4 = inlined_call_operand.hbm [shape: f32[1,128], index: 4, kind: input, shape index: {}]   ;;  %s1428_s5 = inlined_call_operand.hbm [shape: f32[32,128], index: 5, kind: output, shape index: {}]  }
   0x1   :  { %11 = vsyncpa [#allocation6], 0 }
   0x2   :  { %12 = vsyncpa [#allocation9], 0 }
   0x3   :  { %13 = vsyncpa [#allocation4], 0  ;;  %s1161_s18 = smov [#allocation5]   ;;  %s1021_s22 = scalar_lea.hbm %s1424_s1, 8192 }
   0x4   :  { %s31_s19 = sshll.u32 %s1161_s18, 4  ;;  %p1022_p0 = scmp.ne.s32.totalorder %s1424_s1, %s1021_s22  ;;  %s32_s19 = int_to_ptr.vmem [resolvable:$true] %s31_s19 }
   0x5   :  { %p1025_p1 = scmp.lt.u32.totalorder %s1021_s22, %s1424_s1 }
   0x7   :  { %p1027_p2 = pnand %p1025_p1, %p1022_p0 }
   0x9   :  { %1030 = shalt.err (!%p1027_p2)
}
   0xa   :  { %s1031_s27 = scalar_lea.vmem %s32_s19, 8192  ;;  %p1036_p4 = scmp.lt.s32.totalorder %s32_s19, %s32_s19 }
   0xb   :  { %p1032_p3 = scmp.ne.s32.totalorder %s32_s19, %s1031_s27  ;;  %p1037_p5 = scmp.lt.s32.totalorder %s1031_s27, %s1031_s27 }
   0xd   :  { %p1038_p6 = por %p1037_p5, %p1036_p4 }
   0xf   :  { %p1039_p7 = pnand %p1038_p6, %p1032_p3 }
  0x11   :  { %1042 = shalt.err (!%p1039_p7)
}
  0x12   :  { %s1162_s28 = smov 512   ;;  %s1163_s29 = smov 32  }
  0x13   :  { %37 = dma.hbm_to_vmem [thread:$0]  %s1424_s1, 8192, %s32_s19, [#allocation6], %s1162_s28, %s1162_s28, %s1163_s29  }
  0x14   :  { %s1164_s7 = smov [#allocation8]   ;;  %s1165_s9 = smov [#allocation2]  }
  0x15   :  { %s53_s8 = sshll.u32 %s1164_s7, 4  ;;  %s19_s10 = sshll.u32 %s1165_s9, 4  ;;  %s54_s8 = int_to_ptr.vmem [resolvable:$true] %s53_s8  ;;  %s20_s10 = int_to_ptr.vmem [resolvable:$true] %s19_s10 }
  0x16   :  { %s1043_s13 = scalar_lea.hbm %s1426_s3, 8192 }
  0x17   :  { %p1044_p8 = scmp.ne.s32.totalorder %s1426_s3, %s1043_s13  ;;  %p1047_p9 = scmp.lt.u32.totalorder %s1043_s13, %s1426_s3 }
  0x19   :  { %p1049_p10 = pnand %p1047_p9, %p1044_p8 }
  0x1b   :  { %1052 = shalt.err (!%p1049_p10)
}
  0x1c   :  { %s1053_s1 = scalar_lea.vmem %s54_s8, 8192  ;;  %p1058_p12 = scmp.lt.s32.totalorder %s54_s8, %s54_s8 }
  0x1d   :  { %p1054_p11 = scmp.ne.s32.totalorder %s54_s8, %s1053_s1  ;;  %p1059_p13 = scmp.lt.s32.totalorder %s1053_s1, %s1053_s1 }
  0x1f   :  { %p1060_p0 = por %p1059_p13, %p1058_p12 }
  0x21   :  { %p1061_p1 = pnand %p1060_p0, %p1054_p11 }
  0x23   :  { %1064 = shalt.err (!%p1061_p1)
}
  0x24   :  { %s1166_s18 = smov 128   ;;  %s1167_s19 = smov 8  }
  0x25   :  { %59 = dma.hbm_to_vmem [thread:$0]  %s1426_s3, 8192, %s54_s8, [#allocation9], %s1166_s18, %s1166_s18, %s1167_s19  }
  0x26   :  { %s1065_s24 = scalar_lea.hbm %s1423_s0, 512 }
  0x27   :  { %p1066_p2 = scmp.ne.s32.totalorder %s1423_s0, %s1065_s24  ;;  %p1069_p3 = scmp.lt.u32.totalorder %s1065_s24, %s1423_s0 }
  0x29   :  { %p1071_p4 = pnand %p1069_p3, %p1066_p2 }
  0x2b   :  { %1074 = shalt.err (!%p1071_p4)
}
  0x2c   :  { %s1075_s29 = scalar_lea.vmem %s20_s10, 512  ;;  %p1080_p6 = scmp.lt.s32.totalorder %s20_s10, %s20_s10 }
  0x2d   :  { %p1076_p5 = scmp.ne.s32.totalorder %s20_s10, %s1075_s29  ;;  %p1081_p7 = scmp.lt.s32.totalorder %s1075_s29, %s1075_s29 }
  0x2f   :  { %p1082_p8 = por %p1081_p7, %p1080_p6 }
  0x31   :  { %p1083_p9 = pnand %p1082_p8, %p1076_p5 }
  0x33   :  { %1086 = shalt.err (!%p1083_p9)
}
  0x34   :  { %25 = dma.hbm_to_vmem [thread:$0]  %s1423_s0, 512, %s20_s10, [#allocation3], %s1166_s18, %s1166_s18, %s1167_s19  }
  0x35   :  { %s1168_s6 = smov [#allocation7]   ;;  %s1169_s8 = smov [#allocation10]  }
  0x36   :  { %s44_s7 = sshll.u32 %s1168_s6, 4  ;;  %s66_s9 = sshll.u32 %s1169_s8, 4  ;;  %s45_s7 = int_to_ptr.vmem [resolvable:$true] %s44_s7  ;;  %s67_s9 = int_to_ptr.vmem [resolvable:$true] %s66_s9 }
  0x37   :  { %s1087_s13 = scalar_lea.hbm %s1425_s2, 64 }
  0x38   :  { %p1088_p10 = scmp.ne.s32.totalorder %s1425_s2, %s1087_s13  ;;  %p1091_p11 = scmp.lt.u32.totalorder %s1087_s13, %s1425_s2 }
  0x3a   :  { %p1093_p12 = pnand %p1091_p11, %p1088_p10 }
  0x3c   :  { %1096 = shalt.err (!%p1093_p12)
}
  0x3d   :  { %s1097_s0 = scalar_lea.vmem %s45_s7, 64  ;;  %p1102_p0 = scmp.lt.s32.totalorder %s45_s7, %s45_s7 }
  0x3e   :  { %p1098_p13 = scmp.ne.s32.totalorder %s45_s7, %s1097_s0  ;;  %p1103_p1 = scmp.lt.s32.totalorder %s1097_s0, %s1097_s0 }
  0x40   :  { %p1104_p2 = por %p1103_p1, %p1102_p0 }
  0x42   :  { %p1105_p3 = pnand %p1104_p2, %p1098_p13 }
  0x44   :  { %1108 = shalt.err (!%p1105_p3)
}
  0x45   :  { %47 = dma.hbm_to_vmem [thread:$0]  %s1425_s2, 64, %s45_s7, [#allocation6]  }
  0x46   :  { %s1109_s22 = scalar_lea.hbm %s1427_s4, 16 }
  0x47   :  { %p1110_p4 = scmp.ne.s32.totalorder %s1427_s4, %s1109_s22  ;;  %p1113_p5 = scmp.lt.u32.totalorder %s1109_s22, %s1427_s4 }
  0x49   :  { %p1115_p6 = pnand %p1113_p5, %p1110_p4 }
  0x4b   :  { %1118 = shalt.err (!%p1115_p6)
}
  0x4c   :  { %s1119_s27 = scalar_lea.vmem %s67_s9, 16  ;;  %s1123_s28 = scalar_lea.vmem %s67_s9, 32 }
  0x4d   :  { %p1120_p7 = scmp.ne.s32.totalorder %s67_s9, %s1119_s27  ;;  %p1124_p8 = scmp.lt.s32.totalorder %s67_s9, %s67_s9 }
  0x4e   :  { %p1125_p9 = scmp.lt.s32.totalorder %s1123_s28, %s1119_s27 }
  0x50   :  { %p1126_p10 = por %p1125_p9, %p1124_p8 }
  0x52   :  { %p1127_p11 = pnand %p1126_p10, %p1120_p7 }
  0x54   :  { %1130 = shalt.err (!%p1127_p11)
}
  0x55   :  { %69 = dma.hbm_to_vmem [thread:$0]  %s1427_s4, 16, %s67_s9, [#allocation9]  }
  0x56   :  { %1153 = dma.done.wait [#allocation3], 512  }
  0x57   :  { %1154 = vsyncadd [#allocation3], 4294966784 }
  0x58   :  { %1155 = dma.done.wait [#allocation6], 8256  }
  0x59   :  { %1156 = vsyncadd [#allocation6], 4294959040 }
  0x5a   :  { %1157 = dma.done.wait [#allocation9], 8208  }
  0x5b   :  { %1158 = vsyncadd [#allocation9], 4294959088  ;;  %v1170_v0 = vmov 0.0   ;;  %v90_v1 = vld [vmem:[#allocation5 + $0x8] sm:$0xff]  ;;  %v92_v3 = vld [vmem:[#allocation5 + $0x18] sm:$0xff]  ;;  %s1171_s4 = smov [#allocation11]  }
  0x5c   :  { %239 = vmatprep.mubr.f32.mxu0 %v1170_v0  ;;  %328 = vmatprep.mubr.f32.mxu1 %v1170_v0  ;;  %v94_v2 = vld [vmem:[#allocation5 + $0x28] sm:$0xff]  ;;  %v96_v5 = vld [vmem:[#allocation5 + $0x38] sm:$0xff]  ;;  %v89_v6 = vld [vmem:[#allocation5] sm:$0xff]  ;;  %s747_s3 = sshll.u32 %s1171_s4, 4  ;;  %s748_s3 = int_to_ptr.vmem [resolvable:$true] %s747_s3 }
  0x5d   :  { %v850_v4 = vpack.c.bf16 %v94_v2, %v90_v1  ;;  %v93_v7 = vld [vmem:[#allocation5 + $0x20] sm:$0xff]  ;;  %v882_v8 = vpack.c.bf16 %v96_v5, %v92_v3  ;;  %v91_v10 = vld [vmem:[#allocation5 + $0x10] sm:$0xff]  ;;  %v98_v12 = vld [vmem:[#allocation5 + $0x48] sm:$0xff]  ;;  %s1131_s30 = scalar_lea.vmem %s748_s3, 512  ;;  %p1136_p13 = scmp.lt.s32.totalorder %s748_s3, %s748_s3 }
  0x5e   :  { %v852_v9 = vpack.c.bf16 %v93_v7, %v89_v6  ;;  %v95_v11 = vld [vmem:[#allocation5 + $0x30] sm:$0xff]  ;;  %v102_v14 = vld [vmem:[#allocation5 + $0x68] sm:$0xff]  ;;  %v100_v15 = vld [vmem:[#allocation5 + $0x58] sm:$0xff]  ;;  %p1132_p12 = scmp.ne.s32.totalorder %s748_s3, %s1131_s30  ;;  %p1137_p0 = scmp.lt.s32.totalorder %s1131_s30, %s1131_s30 }
  0x5f   :  { %851 = vmatprep.subr.bf16.mxu0 %v850_v4  ;;  %v884_v13 = vpack.c.bf16 %v95_v11, %v91_v10  ;;  %v104_v16 = vld [vmem:[#allocation5 + $0x78] sm:$0xff]  ;;  %883 = vmatprep.subr.bf16.mxu1 %v882_v8  ;;  %v854_v17 = vpack.c.bf16 %v102_v14, %v98_v12  ;;  %v97_v19 = vld [vmem:[#allocation5 + $0x40] sm:$0xff]  ;;  %v99_v21 = vld [vmem:[#allocation5 + $0x50] sm:$0xff] }
  0x60   :  { %853 = vmatpush1.bf16.msra.mxu0 %v852_v9  ;;  %v886_v18 = vpack.c.bf16 %v104_v16, %v100_v15  ;;  %v101_v20 = vld [vmem:[#allocation5 + $0x60] sm:$0xff]  ;;  %v103_v23 = vld [vmem:[#allocation5 + $0x70] sm:$0xff]  ;;  %v106_v24 = vld [vmem:[#allocation5 + $0x88] sm:$0xff]  ;;  %p1138_p1 = por %p1137_p0, %p1136_p13 }
  0x61   :  { %885 = vmatpush1.bf16.msra.mxu1 %v884_v13  ;;  %v856_v22 = vpack.c.bf16 %v101_v20, %v97_v19  ;;  %v110_v25 = vld [vmem:[#allocation5 + $0xa8] sm:$0xff]  ;;  %855 = vmatprep.subr.bf16.mxu0 %v854_v17  ;;  %v888_v26 = vpack.c.bf16 %v103_v23, %v99_v21  ;;  %v108_v28 = vld [vmem:[#allocation5 + $0x98] sm:$0xff]  ;;  %v105_v30 = vld [vmem:[#allocation5 + $0x80] sm:$0xff] }
  0x62   :  { %887 = vmatprep.subr.bf16.mxu1 %v886_v18  ;;  %v858_v27 = vpack.c.bf16 %v110_v25, %v106_v24  ;;  %v112_v29 = vld [vmem:[#allocation5 + $0xb8] sm:$0xff]  ;;  %v109_v32 = vld [vmem:[#allocation5 + $0xa0] sm:$0xff]  ;;  %v107_v33 = vld [vmem:[#allocation5 + $0x90] sm:$0xff]  ;;  %p1139_p2 = pnand %p1138_p1, %p1132_p12 }
  0x63   :  { %v890_v31 = vpack.c.bf16 %v112_v29, %v108_v28  ;;  %v111_v34 = vld [vmem:[#allocation5 + $0xb0] sm:$0xff]  ;;  %v860_v35 = vpack.c.bf16 %v109_v32, %v105_v30  ;;  %v114_v36 = vld [vmem:[#allocation5 + $0xc8] sm:$0xff]  ;;  %v116_v38 = vld [vmem:[#allocation5 + $0xd8] sm:$0xff] }
  0x64   :  { %857 = vmatpush1.bf16.msra.mxu0 %v856_v22  ;;  %v118_v37 = vld [vmem:[#allocation5 + $0xe8] sm:$0xff]  ;;  %v892_v39 = vpack.c.bf16 %v111_v34, %v107_v33  ;;  %v120_v41 = vld [vmem:[#allocation5 + $0xf8] sm:$0xff]  ;;  %v113_v42 = vld [vmem:[#allocation5 + $0xc0] sm:$0xff] }
  0x65   :  { %889 = vmatpush1.bf16.msra.mxu1 %v888_v26  ;;  %859 = vmatprep.subr.bf16.mxu0 %v858_v27  ;;  %v862_v40 = vpack.c.bf16 %v118_v37, %v114_v36  ;;  %v117_v43 = vld [vmem:[#allocation5 + $0xe0] sm:$0xff]  ;;  %v894_v44 = vpack.c.bf16 %v120_v41, %v116_v38  ;;  %v115_v45 = vld [vmem:[#allocation5 + $0xd0] sm:$0xff]  ;;  %v122_v47 = vld [vmem:[#allocation5 + $0x108] sm:$0xff] }
  0x66   :  { %891 = vmatprep.subr.bf16.mxu1 %v890_v31  ;;  %v119_v46 = vld [vmem:[#allocation5 + $0xf0] sm:$0xff]  ;;  %v126_v48 = vld [vmem:[#allocation5 + $0x128] sm:$0xff]  ;;  %v124_v49 = vld [vmem:[#allocation5 + $0x118] sm:$0xff]  ;;  %v864_v51 = vpack.c.bf16 %v117_v43, %v113_v42 }
  0x67   :  { %v128_v50 = vld [vmem:[#allocation5 + $0x138] sm:$0xff]  ;;  %v896_v52 = vpack.c.bf16 %v119_v46, %v115_v45  ;;  %v866_v53 = vpack.c.bf16 %v126_v48, %v122_v47  ;;  %v121_v54 = vld [vmem:[#allocation5 + $0x100] sm:$0xff]  ;;  %v123_v56 = vld [vmem:[#allocation5 + $0x110] sm:$0xff] }
  0x68   :  { %861 = vmatpush1.bf16.msra.mxu0 %v860_v35  ;;  %v125_v55 = vld [vmem:[#allocation5 + $0x120] sm:$0xff]  ;;  %v898_v57 = vpack.c.bf16 %v128_v50, %v124_v49  ;;  %v127_v58 = vld [vmem:[#allocation5 + $0x130] sm:$0xff]  ;;  %v130_v59 = vld [vmem:[#allocation5 + $0x148] sm:$0xff] }
  0x69   :  { %893 = vmatpush1.bf16.msra.mxu1 %v892_v39  ;;  %863 = vmatprep.subr.bf16.mxu0 %v862_v40  ;;  %v134_v60 = vld [vmem:[#allocation5 + $0x168] sm:$0xff]  ;;  %v132_v61 = vld [vmem:[#allocation5 + $0x158] sm:$0xff]  ;;  %v868_v63 = vpack.c.bf16 %v125_v55, %v121_v54  ;;  %v900_v1 = vpack.c.bf16 %v127_v58, %v123_v56  ;;  %v129_v3 = vld [vmem:[#allocation5 + $0x140] sm:$0xff] }
  0x6a   :  { %895 = vmatprep.subr.bf16.mxu1 %v894_v44  ;;  %v136_v62 = vld [vmem:[#allocation5 + $0x178] sm:$0xff]  ;;  %v870_v2 = vpack.c.bf16 %v134_v60, %v130_v59  ;;  %v133_v4 = vld [vmem:[#allocation5 + $0x160] sm:$0xff]  ;;  %v131_v5 = vld [vmem:[#allocation5 + $0x150] sm:$0xff] }
  0x6b   :  { %v902_v6 = vpack.c.bf16 %v136_v62, %v132_v61  ;;  %v135_v7 = vld [vmem:[#allocation5 + $0x170] sm:$0xff]  ;;  %v138_v8 = vld [vmem:[#allocation5 + $0x188] sm:$0xff]  ;;  %v140_v10 = vld [vmem:[#allocation5 + $0x198] sm:$0xff]  ;;  %v872_v12 = vpack.c.bf16 %v133_v4, %v129_v3 }
  0x6c   :  { %865 = vmatpush1.bf16.msra.mxu0 %v864_v51  ;;  %v142_v9 = vld [vmem:[#allocation5 + $0x1a8] sm:$0xff]  ;;  %v144_v11 = vld [vmem:[#allocation5 + $0x1b8] sm:$0xff]  ;;  %v904_v13 = vpack.c.bf16 %v135_v7, %v131_v5  ;;  %v137_v15 = vld [vmem:[#allocation5 + $0x180] sm:$0xff] }
  0x6d   :  { %897 = vmatpush1.bf16.msra.mxu1 %v896_v52  ;;  %867 = vmatprep.subr.bf16.mxu0 %v866_v53  ;;  %v874_v14 = vpack.c.bf16 %v142_v9, %v138_v8  ;;  %v141_v16 = vld [vmem:[#allocation5 + $0x1a0] sm:$0xff]  ;;  %v139_v17 = vld [vmem:[#allocation5 + $0x190] sm:$0xff]  ;;  %v906_v18 = vpack.c.bf16 %v144_v11, %v140_v10  ;;  %v146_v20 = vld [vmem:[#allocation5 + $0x1c8] sm:$0xff] }
  0x6e   :  { %899 = vmatprep.subr.bf16.mxu1 %v898_v57  ;;  %v143_v19 = vld [vmem:[#allocation5 + $0x1b0] sm:$0xff]  ;;  %v150_v21 = vld [vmem:[#allocation5 + $0x1e8] sm:$0xff]  ;;  %v148_v22 = vld [vmem:[#allocation5 + $0x1d8] sm:$0xff]  ;;  %v876_v24 = vpack.c.bf16 %v141_v16, %v137_v15 }
  0x6f   :  { %v152_v23 = vld [vmem:[#allocation5 + $0x1f8] sm:$0xff]  ;;  %v908_v25 = vpack.c.bf16 %v143_v19, %v139_v17  ;;  %v878_v26 = vpack.c.bf16 %v150_v21, %v146_v20  ;;  %v145_v27 = vld [vmem:[#allocation5 + $0x1c0] sm:$0xff]  ;;  %v147_v29 = vld [vmem:[#allocation5 + $0x1d0] sm:$0xff] }
  0x70   :  { %869 = vmatpush1.bf16.msra.mxu0 %v868_v63  ;;  %v149_v28 = vld [vmem:[#allocation5 + $0x1e0] sm:$0xff]  ;;  %v910_v30 = vpack.c.bf16 %v152_v23, %v148_v22  ;;  %v151_v31 = vld [vmem:[#allocation5 + $0x1f0] sm:$0xff]  ;;  %v86_v47 = vld [vmem:[#allocation2 + $0x8] sm:$0xff] }
  0x71   :  { %901 = vmatpush1.bf16.msra.mxu1 %v900_v1  ;;  %871 = vmatprep.subr.bf16.mxu0 %v870_v2  ;;  %v513_v32 = vld [vmem:[#allocation8 + $0x80] sm:$0xff]  ;;  %v514_v33 = vld [vmem:[#allocation8 + $0x88] sm:$0xff]  ;;  %v880_v36 = vpack.c.bf16 %v149_v28, %v145_v27  ;;  %v912_v37 = vpack.c.bf16 %v151_v31, %v147_v29  ;;  %v88_v49 = vld [vmem:[#allocation2 + $0x18] sm:$0xff] }
  0x72   :  { %903 = vmatprep.subr.bf16.mxu1 %v902_v6  ;;  %v545_v34 = vld [vmem:[#allocation8 + $0x180] sm:$0xff]  ;;  %v546_v35 = vld [vmem:[#allocation8 + $0x188] sm:$0xff]  ;;  %v914_v38 = vpack.c.bf16 %v514_v33, %v513_v32  ;;  %v515_v50 = vld [vmem:[#allocation8 + $0x90] sm:$0xff] }
  0x73   :  { %v946_v39 = vpack.c.bf16 %v546_v35, %v545_v34  ;;  %v497_v40 = vld [vmem:[#allocation8] sm:$0xff]  ;;  %v498_v41 = vld [vmem:[#allocation8 + $0x8] sm:$0xff]  ;;  %v516_v51 = vld [vmem:[#allocation8 + $0x98] sm:$0xff] }
  0x74   :  { %873 = vmatpush1.bf16.msra.mxu0 %v872_v12  ;;  %v529_v42 = vld [vmem:[#allocation8 + $0x100] sm:$0xff]  ;;  %v530_v43 = vld [vmem:[#allocation8 + $0x108] sm:$0xff]  ;;  %v916_v45 = vpack.c.bf16 %v498_v41, %v497_v40  ;;  %v547_v52 = vld [vmem:[#allocation8 + $0x190] sm:$0xff]  ;;  %v918_v53 = vpack.c.bf16 %v516_v51, %v515_v50 }
  0x75   :  { %905 = vmatpush1.bf16.msra.mxu1 %v904_v13  ;;  %875 = vmatprep.subr.bf16.mxu0 %v874_v14  ;;  %v85_v44 = vld [vmem:[#allocation2] sm:$0xff]  ;;  %v948_v46 = vpack.c.bf16 %v530_v43, %v529_v42  ;;  %v87_v48 = vld [vmem:[#allocation2 + $0x10] sm:$0xff] }
  0x76   :  { %907 = vmatprep.subr.bf16.mxu1 %v906_v18  ;;  %v548_v54 = vld [vmem:[#allocation8 + $0x198] sm:$0xff]  ;;  %v499_v55 = vld [vmem:[#allocation8 + $0x10] sm:$0xff]  ;;  %v517_v62 = vld [vmem:[#allocation8 + $0xa0] sm:$0xff] }
  0x77   :  { %v500_v56 = vld [vmem:[#allocation8 + $0x18] sm:$0xff]  ;;  %v950_v57 = vpack.c.bf16 %v548_v54, %v547_v52  ;;  %v531_v59 = vld [vmem:[#allocation8 + $0x110] sm:$0xff]  ;;  %v518_v63 = vld [vmem:[#allocation8 + $0xa8] sm:$0xff] }
  0x78   :  { %877 = vmatpush1.bf16.msra.mxu0 %v876_v24  ;;  %v920_v58 = vpack.c.bf16 %v500_v56, %v499_v55  ;;  %v532_v60 = vld [vmem:[#allocation8 + $0x118] sm:$0xff]  ;;  %v922_v1 = vpack.c.bf16 %v518_v63, %v517_v62  ;;  %v550_v2 = vld [vmem:[#allocation8 + $0x1a8] sm:$0xff]  ;;  %v501_v3 = vld [vmem:[#allocation8 + $0x20] sm:$0xff] }
  0x79   :  { %909 = vmatpush1.bf16.msra.mxu1 %v908_v25  ;;  %879 = vmatprep.subr.bf16.mxu0 %v878_v26  ;;  %v952_v61 = vpack.c.bf16 %v532_v60, %v531_v59  ;;  %v502_v4 = vld [vmem:[#allocation8 + $0x28] sm:$0xff]  ;;  %v533_v7 = vld [vmem:[#allocation8 + $0x120] sm:$0xff]  ;;  %v519_v10 = vld [vmem:[#allocation8 + $0xb0] sm:$0xff] }
  0x7a   :  { %911 = vmatprep.subr.bf16.mxu1 %v910_v30  ;;  %v924_v6 = vpack.c.bf16 %v502_v4, %v501_v3  ;;  %v534_v8 = vld [vmem:[#allocation8 + $0x128] sm:$0xff]  ;;  %v520_v11 = vld [vmem:[#allocation8 + $0xb8] sm:$0xff]  ;;  %v551_v12 = vld [vmem:[#allocation8 + $0x1b0] sm:$0xff] }
  0x7b   :  { %v956_v9 = vpack.c.bf16 %v534_v8, %v533_v7  ;;  %v926_v13 = vpack.c.bf16 %v520_v11, %v519_v10  ;;  %v552_v14 = vld [vmem:[#allocation8 + $0x1b8] sm:$0xff]  ;;  %v503_v15 = vld [vmem:[#allocation8 + $0x30] sm:$0xff]  ;;  %v521_v22 = vld [vmem:[#allocation8 + $0xc0] sm:$0xff] }
  0x7c   :  { %881 = vmatpush1.bf16.msra.mxu0 %v880_v36  ;;  %v504_v16 = vld [vmem:[#allocation8 + $0x38] sm:$0xff]  ;;  %v958_v17 = vpack.c.bf16 %v552_v14, %v551_v12  ;;  %v535_v19 = vld [vmem:[#allocation8 + $0x130] sm:$0xff]  ;;  %v522_v23 = vld [vmem:[#allocation8 + $0xc8] sm:$0xff] }
  0x7d   :  { %913 = vmatpush1.bf16.msra.mxu1 %v912_v37  ;;  %915 = vmatprep.subr.bf16.mxu0 %v914_v38  ;;  %v928_v18 = vpack.c.bf16 %v504_v16, %v503_v15  ;;  %v536_v20 = vld [vmem:[#allocation8 + $0x138] sm:$0xff]  ;;  %v553_v24 = vld [vmem:[#allocation8 + $0x1c0] sm:$0xff]  ;;  %v930_v25 = vpack.c.bf16 %v522_v23, %v521_v22  ;;  %v554_v26 = vld [vmem:[#allocation8 + $0x1c8] sm:$0xff] }
  0x7e   :  { %947 = vmatprep.subr.bf16.mxu1 %v946_v39  ;;  %v960_v21 = vpack.c.bf16 %v536_v20, %v535_v19  ;;  %v505_v27 = vld [vmem:[#allocation8 + $0x40] sm:$0xff]  ;;  %v506_v28 = vld [vmem:[#allocation8 + $0x48] sm:$0xff]  ;;  %v962_v29 = vpack.c.bf16 %v554_v26, %v553_v24  ;;  %v523_v34 = vld [vmem:[#allocation8 + $0xd0] sm:$0xff] }
  0x7f   :  { %240 = vmatmul.mubr.f32.vlgmr.msra.gmra.mrb[0].mxu0 %v85_v44  ;;  %v932_v30 = vpack.c.bf16 %v506_v28, %v505_v27  ;;  %v537_v31 = vld [vmem:[#allocation8 + $0x140] sm:$0xff]  ;;  %v538_v32 = vld [vmem:[#allocation8 + $0x148] sm:$0xff]  ;;  %v524_v35 = vld [vmem:[#allocation8 + $0xd8] sm:$0xff] }
  0x80   :  { %329 = vmatmul.mubr.f32.vlgmr.msra.gmra.mrb[0].mxu1 %v85_v44  ;;  %245 = vmatprep.mubr.f32.mxu0 %v1170_v0  ;;  %v964_v33 = vpack.c.bf16 %v538_v32, %v537_v31  ;;  %v555_v36 = vld [vmem:[#allocation8 + $0x1d0] sm:$0xff]  ;;  %v934_v37 = vpack.c.bf16 %v524_v35, %v523_v34  ;;  %v556_v38 = vld [vmem:[#allocation8 + $0x1d8] sm:$0xff]  ;;  %v509_v52 = vld [vmem:[#allocation8 + $0x60] sm:$0xff] }
  0x81   :  { %334 = vmatprep.mubr.f32.mxu1 %v1170_v0  ;;  %917 = vmatpush3.bf16.msra.mxu0 %v916_v45  ;;  %v507_v39 = vld [vmem:[#allocation8 + $0x50] sm:$0xff]  ;;  %v508_v40 = vld [vmem:[#allocation8 + $0x58] sm:$0xff]  ;;  %v966_v41 = vpack.c.bf16 %v556_v38, %v555_v36  ;;  %v525_v45 = vld [vmem:[#allocation8 + $0xe0] sm:$0xff] }
  0x82   :  { %949 = vmatpush3.bf16.msra.mxu1 %v948_v46  ;;  %919 = vmatprep.subr.bf16.mxu0 %v918_v53  ;;  %v936_v42 = vpack.c.bf16 %v508_v40, %v507_v39  ;;  %v539_v43 = vld [vmem:[#allocation8 + $0x150] sm:$0xff]  ;;  %v540_v44 = vld [vmem:[#allocation8 + $0x158] sm:$0xff]  ;;  %v510_v53 = vld [vmem:[#allocation8 + $0x68] sm:$0xff] }
  0x83   :  { %246 = vmatmul.mubr.f32.gmra.mrb[2].mxu0 %v86_v47  ;;  %951 = vmatprep.subr.bf16.mxu1 %v950_v57  ;;  %v968_v46 = vpack.c.bf16 %v540_v44, %v539_v43  ;;  %v541_v54 = vld [vmem:[#allocation8 + $0x160] sm:$0xff]  ;;  %v940_v55 = vpack.c.bf16 %v510_v53, %v509_v52  ;;  %v542_v56 = vld [vmem:[#allocation8 + $0x168] sm:$0xff]  ;;  %v527_v57 = vld [vmem:[#allocation8 + $0xf0] sm:$0xff] }
  0x84   :  { %335 = vmatmul.mubr.f32.gmra.mrb[2].mxu1 %v86_v47  ;;  %251 = vmatprep.mubr.f32.mxu0 %v1170_v0  ;;  %v526_v47 = vld [vmem:[#allocation8 + $0xe8] sm:$0xff]  ;;  %v972_v59 = vpack.c.bf16 %v542_v56, %v541_v54  ;;  %v560_v62 = vld [vmem:[#allocation8 + $0x1f8] sm:$0xff]  ;;  %v511_v63 = vld [vmem:[#allocation8 + $0x70] sm:$0xff] }
  0x85   :  { %340 = vmatprep.mubr.f32.mxu1 %v1170_v0  ;;  %921 = vmatpush3.bf16.msra.mxu0 %v920_v58  ;;  %v938_v50 = vpack.c.bf16 %v526_v47, %v525_v45  ;;  %v528_v58 = vld [vmem:[#allocation8 + $0xf8] sm:$0xff] }
  0x86   :  { %953 = vmatpush3.bf16.msra.mxu1 %v952_v61  ;;  %923 = vmatprep.subr.bf16.mxu0 %v922_v1  ;;  %v942_v60 = vpack.c.bf16 %v528_v58, %v527_v57  ;;  %v559_v61 = vld [vmem:[#allocation8 + $0x1f0] sm:$0xff]  ;;  %v512_v1 = vld [vmem:[#allocation8 + $0x78] sm:$0xff] }
  0x87   :  { %252 = vmatmul.mubr.f32.gmra.mrb[4].mxu0 %v87_v48  ;;  %v544_v3 = vld [vmem:[#allocation8 + $0x178] sm:$0xff]  ;;  %v944_v4 = vpack.c.bf16 %v512_v1, %v511_v63 }
  0x88   :  { %341 = vmatmul.mubr.f32.gmra.mrb[4].mxu1 %v87_v48  ;;  %257 = vmatprep.mubr.f32.mxu0 %v1170_v0  ;;  %v557_v48 = vld [vmem:[#allocation8 + $0x1e0] sm:$0xff] }
  0x89   :  { %346 = vmatprep.mubr.f32.mxu1 %v1170_v0  ;;  %v549_v0 = vld [vmem:[#allocation8 + $0x1a0] sm:$0xff]  ;;  %925 = vmatpush3.bf16.msra.mxu0 %v924_v6  ;;  %v155_v6 = vlaneseq }
  0x8a   :  { %v954_v5 = vpack.c.bf16 %v550_v2, %v549_v0  ;;  %927 = vmatprep.subr.bf16.mxu0 %v926_v13  ;;  %v974_v0 = vpack.c.bf16 %v560_v62, %v559_v61  ;;  %v543_v2 = vld [vmem:[#allocation8 + $0x170] sm:$0xff] }
  0x8b   :  { %258 = vmatmul.mubr.f32.gmra.mrb[6].mxu0 %v88_v49  ;;  %v156_v7 = vshrl.u32 %v155_v6, 7 }
  0x8c   :  { %347 = vmatmul.mubr.f32.gmra.mrb[6].mxu1 %v88_v49  ;;  %955 = vmatprep.subr.bf16.mxu1 %v954_v5  ;;  %v558_v49 = vld [vmem:[#allocation8 + $0x1e8] sm:$0xff]  ;;  %v976_v5 = vpack.c.bf16 %v544_v3, %v543_v2 }
  0x8d   :  { %957 = vmatpush3.bf16.msra.mxu1 %v956_v9  ;;  %929 = vmatpush3.bf16.msra.mxu0 %v928_v18  ;;  %v970_v51 = vpack.c.bf16 %v558_v49, %v557_v48  ;;  %v157_v8 = vsub.s32 0, %v156_v7  ;;  %v153_v9 = vld [vmem:[#allocation7] sm:$0xf]  ;;  %v165_v10 = vsub.s32 2, %v156_v7  ;;  %v161_v11 = vsub.s32 1, %v156_v7 }
  0x8e   :  { %959 = vmatprep.subr.bf16.mxu1 %v958_v17  ;;  %931 = vmatprep.subr.bf16.mxu0 %v930_v25  ;;  %v169_v13 = vsub.s32 3, %v156_v7 }
  0x8f   :  { %v1276_v12 = vrot.slane %v153_v9, %v157_v8  ;;  %v1278_v14 = vrot.slane %v153_v9, %v165_v10  ;;  %v1280_v15 = vrot.slane %v153_v9, %v161_v11 }
  0x90   :  { %v1283_v20 = vrot.slane %v153_v9, %v169_v13 }
  0x91   :  { %961 = vmatpush3.bf16.msra.mxu1 %v960_v21  ;;  %933 = vmatpush3.bf16.msra.mxu0 %v932_v30 }
  0x92   :  { %963 = vmatprep.subr.bf16.mxu1 %v962_v29  ;;  %935 = vmatprep.subr.bf16.mxu0 %v934_v37 }
  0x95   :  { %965 = vmatpush3.bf16.msra.mxu1 %v964_v33  ;;  %937 = vmatpush3.bf16.msra.mxu0 %v936_v42 }
  0x96   :  { %967 = vmatprep.subr.bf16.mxu1 %v966_v41  ;;  %939 = vmatprep.subr.bf16.mxu0 %v938_v50 }
  0x99   :  { %969 = vmatpush3.bf16.msra.mxu1 %v968_v46  ;;  %941 = vmatpush3.bf16.msra.mxu0 %v940_v55 }
  0x9a   :  { %971 = vmatprep.subr.bf16.mxu1 %v970_v51  ;;  %943 = vmatprep.subr.bf16.mxu0 %v942_v60 }
  0x9d   :  { %973 = vmatpush3.bf16.msra.mxu1 %v972_v59  ;;  %945 = vmatpush3.bf16.msra.mxu0 %v944_v4 }
  0x9e   :  { %975 = vmatprep.subr.bf16.mxu1 %v974_v0 }
  0xa1   :  { %977 = vmatpush3.bf16.msra.mxu1 %v976_v5 }
 0x152   :  { %v241_v16 = vpop.f32.mrb[0].mxu0 }
 0x153   :  { %v242_v17 = vadd.f32 %v241_v16, %v1276_v12  ;;  %v330_v18 = vpop.f32.mrb[0].mxu1  ;;  %v243_v19 = vpop.f32.mrb[1].mxu0 }
 0x154   :  { %v1286_v21 = vadd.f32 %v330_v18, %v1278_v14  ;;  %v1289_v22 = vadd.f32 %v243_v19, %v1280_v15  ;;  %v332_v23 = vpop.f32.mrb[1].mxu1 }
 0x155   :  { %v369_v24 = vmul.f32 0.044715, %v242_v17  ;;  %v1294_v29 = vadd.f32 %v332_v23, %v1283_v20  ;;  %v1335_v4 = vmul.f32 0.5, %v242_v17 }
 0x156   :  { %v371_v25 = vmul.f32 0.044715, %v1286_v21  ;;  %v370_v26 = vmul.f32 0.044715, %v1289_v22  ;;  %v247_v27 = vpop.f32.mrb[2].mxu0 }
 0x157   :  { %v385_v28 = vmul.f32 %v369_v24, %v242_v17  ;;  %v336_v30 = vpop.f32.mrb[2].mxu1  ;;  %v249_v31 = vpop.f32.mrb[3].mxu0  ;;  %v1302_v37 = vadd.f32 %v247_v27, %v1276_v12  ;;  %v372_v44 = vmul.f32 0.044715, %v1294_v29 }
 0x158   :  { %v387_v32 = vmul.f32 %v371_v25, %v1286_v21  ;;  %v386_v33 = vmul.f32 %v370_v26, %v1289_v22  ;;  %v1299_v34 = vadd.f32 %v249_v31, %v1280_v15  ;;  %v338_v35 = vpop.f32.mrb[3].mxu1  ;;  %v1306_v39 = vadd.f32 %v336_v30, %v1278_v14 }
 0x159   :  { %v401_v36 = vmul.f32 %v385_v28, %v242_v17  ;;  %v1309_v40 = vadd.f32 %v338_v35, %v1283_v20  ;;  %v373_v52 = vmul.f32 0.044715, %v1302_v37  ;;  %v388_v61 = vmul.f32 %v372_v44, %v1294_v29 }
 0x15a   :  { %v403_v38 = vmul.f32 %v387_v32, %v1286_v21  ;;  %v253_v41 = vpop.f32.mrb[4].mxu0  ;;  %v402_v42 = vmul.f32 %v386_v33, %v1289_v22  ;;  %v374_v48 = vmul.f32 0.044715, %v1299_v34  ;;  %v375_v55 = vmul.f32 0.044715, %v1306_v39 }
 0x15b   :  { %v417_v43 = vadd.f32 %v401_v36, %v242_v17  ;;  %v342_v45 = vpop.f32.mrb[4].mxu1  ;;  %v255_v46 = vpop.f32.mrb[5].mxu0  ;;  %v1316_v49 = vadd.f32 %v253_v41, %v1276_v12  ;;  %v376_v56 = vmul.f32 0.044715, %v1309_v40  ;;  %v389_v7 = vmul.f32 %v373_v52, %v1302_v37 }
 0x15c   :  { %v419_v47 = vadd.f32 %v403_v38, %v1286_v21  ;;  %v344_v50 = vpop.f32.mrb[5].mxu1  ;;  %v1320_v53 = vadd.f32 %v342_v45, %v1278_v14  ;;  %v1323_v54 = vadd.f32 %v255_v46, %v1280_v15  ;;  %v418_v59 = vadd.f32 %v402_v42, %v1289_v22 }
 0x15d   :  { %v433_v51 = vmul.f32 0.7978846, %v417_v43  ;;  %v1328_v57 = vadd.f32 %v344_v50, %v1283_v20  ;;  %v390_v0 = vmul.f32 %v374_v48, %v1299_v34  ;;  %v377_v1 = vmul.f32 0.044715, %v1316_v49 }
 0x15e   :  { %v259_v58 = vpop.f32.mrb[6].mxu0  ;;  %v435_v60 = vmul.f32 0.7978846, %v419_v47  ;;  %v378_v2 = vmul.f32 0.044715, %v1323_v54  ;;  %v391_v8 = vmul.f32 %v375_v55, %v1306_v39  ;;  %v392_v9 = vmul.f32 %v376_v56, %v1309_v40 }
 0x15f   :  { %v348_v62 = vpop.f32.mrb[6].mxu1  ;;  %v261_v63 = vpop.f32.mrb[7].mxu0  ;;  %989 = vtanh.f32 %v433_v51  ;;  %v379_v5 = vmul.f32 0.044715, %v1320_v53  ;;  %v380_v6 = vmul.f32 0.044715, %v1328_v57  ;;  %v1343_v11 = vadd.f32 %v259_v58, %v1276_v12 }
 0x160   :  { %v350_v3 = vpop.f32.mrb[7].mxu1  ;;  %v434_v10 = vmul.f32 0.7978846, %v418_v59  ;;  %991 = vtanh.f32 %v435_v60  ;;  %v1346_v13 = vadd.f32 %v261_v63, %v1280_v15  ;;  %v404_v16 = vmul.f32 %v388_v61, %v1294_v29 }
 0x161   :  { %v393_v17 = vmul.f32 %v377_v1, %v1316_v49  ;;  %v394_v18 = vmul.f32 %v378_v2, %v1323_v54  ;;  %v406_v19 = vmul.f32 %v390_v0, %v1299_v34  ;;  %v395_v23 = vmul.f32 %v379_v5, %v1320_v53 }
 0x162   :  { %993 = vtanh.f32 %v434_v10  ;;  %v396_v24 = vmul.f32 %v380_v6, %v1328_v57  ;;  %v1355_v25 = vadd.f32 %v350_v3, %v1283_v20  ;;  %v420_v12 = vadd.f32 %v404_v16, %v1294_v29 }
 0x163   :  { %v1359_v15 = vadd.f32 %v348_v62, %v1278_v14  ;;  %v422_v26 = vadd.f32 %v406_v19, %v1299_v34  ;;  %v408_v27 = vmul.f32 %v392_v9, %v1309_v40  ;;  %v405_v28 = vmul.f32 %v389_v7, %v1302_v37 }
 0x164   :  { %v381_v30 = vmul.f32 0.044715, %v1343_v11  ;;  %v382_v31 = vmul.f32 0.044715, %v1346_v13  ;;  %v436_v32 = vmul.f32 0.7978846, %v420_v12  ;;  %v407_v33 = vmul.f32 %v391_v8, %v1306_v39 }
 0x165   :  { %v438_v20 = vmul.f32 0.7978846, %v422_v26  ;;  %v424_v35 = vadd.f32 %v408_v27, %v1309_v40  ;;  %v421_v36 = vadd.f32 %v405_v28, %v1302_v37  ;;  %v410_v14 = vmul.f32 %v394_v18, %v1323_v54 }
 0x166   :  { %v384_v38 = vmul.f32 0.044715, %v1355_v25  ;;  %995 = vtanh.f32 %v436_v32  ;;  %v423_v41 = vadd.f32 %v407_v33, %v1306_v39  ;;  %v412_v42 = vmul.f32 %v396_v24, %v1328_v57 }
 0x167   :  { %v383_v43 = vmul.f32 0.044715, %v1359_v15  ;;  %997 = vtanh.f32 %v438_v20  ;;  %v440_v44 = vmul.f32 0.7978846, %v424_v35  ;;  %v437_v45 = vmul.f32 0.7978846, %v421_v36 }
 0x168   :  { %v398_v47 = vmul.f32 %v382_v31, %v1346_v13  ;;  %v439_v48 = vmul.f32 0.7978846, %v423_v41  ;;  %v426_v50 = vadd.f32 %v410_v14, %v1323_v54  ;;  %v428_v51 = vadd.f32 %v412_v42, %v1328_v57 }
 0x169   :  { %v990_v46 = vpop.eup %989  ;;  %v397_v52 = vmul.f32 %v381_v30, %v1343_v11  ;;  %v354_v55 = vmul.f32 0.5, %v1289_v22  ;;  %999 = vtanh.f32 %v440_v44  ;;  %v409_v56 = vmul.f32 %v393_v17, %v1316_v49 }
 0x16a   :  { %v992_v58 = vpop.eup %991  ;;  %v400_v59 = vmul.f32 %v384_v38, %v1355_v25  ;;  %1001 = vtanh.f32 %v437_v45  ;;  %v442_v60 = vmul.f32 0.7978846, %v426_v50  ;;  %v444_v61 = vmul.f32 0.7978846, %v428_v51 }
 0x16b   :  { %v465_v63 = vadd.f32 1.0, %v990_v46  ;;  %1003 = vtanh.f32 %v439_v48  ;;  %v425_v0 = vadd.f32 %v409_v56, %v1316_v49  ;;  %v411_v1 = vmul.f32 %v395_v23, %v1320_v53 }
 0x16c   :  { %v994_v62 = vpop.eup %993  ;;  %v399_v2 = vmul.f32 %v383_v43, %v1359_v15  ;;  %1005 = vtanh.f32 %v442_v60  ;;  %v414_v22 = vmul.f32 %v398_v47, %v1346_v13  ;;  %v355_v5 = vmul.f32 0.5, %v1286_v21 }
 0x16d   :  { %v466_v3 = vadd.f32 1.0, %v994_v62  ;;  %1007 = vtanh.f32 %v444_v61  ;;  %v441_v6 = vmul.f32 0.7978846, %v425_v0  ;;  %v427_v7 = vadd.f32 %v411_v1, %v1320_v53 }
 0x16e   :  { %v467_v9 = vadd.f32 1.0, %v992_v58  ;;  %v430_v10 = vadd.f32 %v414_v22, %v1346_v13  ;;  %v416_v16 = vmul.f32 %v400_v59, %v1355_v25  ;;  %v481_v17 = vmul.f32 %v465_v63, %v1335_v4 }
 0x16f   :  { %v482_v8 = vmul.f32 %v466_v3, %v354_v55  ;;  %1009 = vtanh.f32 %v441_v6  ;;  %v443_v18 = vmul.f32 0.7978846, %v427_v7  ;;  %v413_v19 = vmul.f32 %v397_v52, %v1343_v11 }
 0x170   :  { %v996_v23 = vpop.eup %995  ;;  %v356_v21 = vmul.f32 0.5, %v1294_v29  ;;  %v446_v24 = vmul.f32 0.7978846, %v430_v10  ;;  %v432_v12 = vadd.f32 %v416_v16, %v1355_v25  ;;  %v415_v26 = vmul.f32 %v399_v2, %v1359_v15 }
 0x171   :  { %632 = vmatprep.mubr.f32.mxu0 %v482_v8  ;;  %v998_v27 = vpop.eup %997  ;;  %v468_v28 = vadd.f32 1.0, %v996_v23  ;;  %v358_v30 = vmul.f32 0.5, %v1299_v34  ;;  %1011 = vtanh.f32 %v443_v18  ;;  %v429_v4 = vadd.f32 %v413_v19, %v1343_v11 }
 0x172   :  { %633 = vmatmul.mubr.f32.vlgmr.msra.gmra.mrb[8].mxu0 %v481_v17  ;;  %v470_v31 = vadd.f32 1.0, %v998_v27  ;;  %1013 = vtanh.f32 %v446_v24  ;;  %v448_v32 = vmul.f32 0.7978846, %v432_v12  ;;  %v431_v33 = vadd.f32 %v415_v26, %v1359_v15  ;;  %v761_v24 = vld [vmem:[#allocation10] ss:$0 sm:$0xff] }
 0x173   :  { %v1000_v20 = vpop.eup %999  ;;  %v484_v29 = vmul.f32 %v468_v28, %v356_v21  ;;  %v483_v35 = vmul.f32 %v467_v9, %v355_v5  ;;  %v360_v36 = vmul.f32 0.5, %v1309_v40  ;;  %v445_v14 = vmul.f32 0.7978846, %v429_v4 }
 0x174   :  { %v1002_v38 = vpop.eup %1001  ;;  %v486_v41 = vmul.f32 %v470_v31, %v358_v30  ;;  %v472_v42 = vadd.f32 1.0, %v1000_v20  ;;  %1015 = vtanh.f32 %v448_v32  ;;  %v447_v43 = vmul.f32 0.7978846, %v431_v33 }
 0x175   :  { %v1004_v34 = vpop.eup %1003  ;;  %717 = vmatprep.mubr.f32.mxu1 %v484_v29  ;;  %v357_v44 = vmul.f32 0.5, %v1302_v37  ;;  %v469_v45 = vadd.f32 1.0, %v1002_v38  ;;  %1017 = vtanh.f32 %v445_v14  ;;  %v359_v48 = vmul.f32 0.5, %v1306_v39 }
 0x176   :  { %v1006_v46 = vpop.eup %1005  ;;  %718 = vmatmul.mubr.f32.vlgmr.msra.gmra.mrb[8].mxu1 %v483_v35  ;;  %637 = vmatprep.mubr.f32.mxu0 %v486_v41  ;;  %v488_v47 = vmul.f32 %v472_v42, %v360_v36  ;;  %v471_v50 = vadd.f32 1.0, %v1004_v34  ;;  %1019 = vtanh.f32 %v447_v43  ;;  %v362_v52 = vmul.f32 0.5, %v1323_v54 }
 0x177   :  { %v1008_v40 = vpop.eup %1007  ;;  %v485_v51 = vmul.f32 %v469_v45, %v357_v44  ;;  %v474_v55 = vadd.f32 1.0, %v1006_v46  ;;  %v364_v58 = vmul.f32 0.5, %v1328_v57  ;;  %v361_v62 = vmul.f32 0.5, %v1316_v49 }
 0x178   :  { %722 = vmatprep.mubr.f32.mxu1 %v488_v47  ;;  %v487_v56 = vmul.f32 %v471_v50, %v359_v48  ;;  %v476_v37 = vadd.f32 1.0, %v1008_v40  ;;  %v363_v54 = vmul.f32 0.5, %v1320_v53  ;;  %v366_v3 = vmul.f32 0.5, %v1346_v13 }
 0x179   :  { %v1010_v59 = vpop.eup %1009  ;;  %638 = vmatmul.mubr.f32.gmra.mrb[10].mxu0 %v485_v51  ;;  %v490_v60 = vmul.f32 %v474_v55, %v362_v52  ;;  %v368_v8 = vmul.f32 0.5, %v1355_v25  ;;  %v365_v10 = vmul.f32 0.5, %v1343_v11  ;;  %v367_v53 = vmul.f32 0.5, %v1359_v15 }
 0x17a   :  { %723 = vmatmul.mubr.f32.gmra.mrb[10].mxu1 %v487_v56  ;;  %v492_v61 = vmul.f32 %v476_v37, %v364_v58  ;;  %v473_v39 = vadd.f32 1.0, %v1010_v59 }
 0x17b   :  { %v1012_v63 = vpop.eup %1011  ;;  %642 = vmatprep.mubr.f32.mxu0 %v490_v60 }
 0x17c   :  { %v1014_v0 = vpop.eup %1013  ;;  %727 = vmatprep.mubr.f32.mxu1 %v492_v61  ;;  %v489_v1 = vmul.f32 %v473_v39, %v361_v62  ;;  %v475_v2 = vadd.f32 1.0, %v1012_v63 }
 0x17d   :  { %v478_v57 = vadd.f32 1.0, %v1014_v0 }
 0x17e   :  { %v1016_v22 = vpop.eup %1015  ;;  %643 = vmatmul.mubr.f32.gmra.mrb[12].mxu0 %v489_v1  ;;  %v491_v5 = vmul.f32 %v475_v2, %v363_v54 }
 0x17f   :  { %v1018_v6 = vpop.eup %1017  ;;  %v494_v7 = vmul.f32 %v478_v57, %v366_v3  ;;  %v480_v49 = vadd.f32 1.0, %v1016_v22 }
 0x180   :  { %v1020_v9 = vpop.eup %1019  ;;  %728 = vmatmul.mubr.f32.gmra.mrb[12].mxu1 %v491_v5  ;;  %v477_v16 = vadd.f32 1.0, %v1018_v6 }
 0x181   :  { %647 = vmatprep.mubr.f32.mxu0 %v494_v7  ;;  %v496_v17 = vmul.f32 %v480_v49, %v368_v8  ;;  %v479_v18 = vadd.f32 1.0, %v1020_v9 }
 0x182   :  { %v493_v13 = vmul.f32 %v477_v16, %v365_v10 }
 0x183   :  { %732 = vmatprep.mubr.f32.mxu1 %v496_v17  ;;  %v495_v19 = vmul.f32 %v479_v18, %v367_v53 }
 0x184   :  { %648 = vmatmul.mubr.f32.gmra.mrb[14].mxu0 %v493_v13 }
 0x185   :  { %733 = vmatmul.mubr.f32.gmra.mrb[14].mxu1 %v495_v19 }
 0x245   :  { %v794_v23 = vpop.f32.mrb[8].mxu0 }
 0x246   :  { %v795_v21 = vpop.f32.mrb[9].mxu0 }
 0x247   :  { %v796_v25 = vadd.f32 %v795_v21, %v794_v23 }
 0x249   :  { %v838_v12 = vpop.f32.mrb[8].mxu1  ;;  %v635_v26 = vadd.f32 %v796_v25, %v761_v24 }
 0x24a   :  { %v839_v27 = vpop.f32.mrb[9].mxu1 }
 0x24b   :  { %v840_v28 = vadd.f32 %v839_v27, %v838_v12 }
 0x24c   :  { %v797_v11 = vpop.f32.mrb[10].mxu0 }
 0x24d   :  { %v720_v30 = vadd.f32 %v840_v28, %v635_v26  ;;  %v841_v4 = vpop.f32.mrb[10].mxu1  ;;  %v798_v31 = vpop.f32.mrb[11].mxu0 }
 0x24e   :  { %v799_v32 = vadd.f32 %v798_v31, %v797_v11  ;;  %v842_v15 = vpop.f32.mrb[11].mxu1 }
 0x24f   :  { %738 = vst [vmem:[#allocation11] sm:$0xff] %v720_v30  ;;  %v843_v33 = vadd.f32 %v842_v15, %v841_v4 }
 0x250   :  { %v640_v20 = vadd.f32 %v799_v32, %v761_v24 }
 0x251   :  { %v800_v29 = vpop.f32.mrb[12].mxu0 }
 0x252   :  { %v725_v35 = vadd.f32 %v843_v33, %v640_v20  ;;  %v801_v36 = vpop.f32.mrb[13].mxu0 }
 0x253   :  { %v844_v14 = vpop.f32.mrb[12].mxu1  ;;  %v802_v38 = vadd.f32 %v801_v36, %v800_v29 }
 0x254   :  { %739 = vst [vmem:[#allocation11 + $0x8] sm:$0xff] %v725_v35  ;;  %v845_v41 = vpop.f32.mrb[13].mxu1 }
 0x255   :  { %v645_v42 = vadd.f32 %v802_v38, %v761_v24  ;;  %v846_v43 = vadd.f32 %v845_v41, %v844_v14 }
 0x257   :  { %v730_v34 = vadd.f32 %v846_v43, %v645_v42  ;;  %v803_v44 = vpop.f32.mrb[14].mxu0 }
 0x258   :  { %v847_v45 = vpop.f32.mrb[14].mxu1  ;;  %v804_v46 = vpop.f32.mrb[15].mxu0 }
 0x259   :  { %740 = vst [vmem:[#allocation11 + $0x10] sm:$0xff] %v730_v34  ;;  %v805_v47 = vadd.f32 %v804_v46, %v803_v44  ;;  %v848_v48 = vpop.f32.mrb[15].mxu1 }
 0x25a   :  { %v849_v50 = vadd.f32 %v848_v48, %v847_v45 }
 0x25b   :  { %v650_v40 = vadd.f32 %v805_v47, %v761_v24 }
 0x25d   :  { %v735_v51 = vadd.f32 %v849_v50, %v650_v40 }
 0x25f   :  { %741 = vst [vmem:[#allocation11 + $0x18] sm:$0xff] %v735_v51 }
 0x260   :  { %1142 = shalt.err (!%p1139_p2)
}
 0x261   :  { %s1143_s8 = scalar_lea.hbm %s1428_s5, 512 }
 0x262   :  { %p1144_p3 = scmp.ne.s32.totalorder %s1428_s5, %s1143_s8  ;;  %p1147_p4 = scmp.lt.u32.totalorder %s1143_s8, %s1428_s5 }
 0x264   :  { %p1149_p5 = pnand %p1147_p4, %p1144_p3 }
 0x266   :  { %1152 = shalt.err (!%p1149_p5)
}
 0x267   :  { %753 = dma.vmem_to_hbm [thread:$0]  %s748_s3, 512, %s1428_s5, [#allocation4], %s1166_s18, %s1166_s18, %s1167_s19  }
 0x268   :  { %1159 = dma.done.wait [#allocation4], 512  }
 0x269   :  { %1160 = vsyncadd [#allocation4], 4294966784 }
 0x26a   :  { %757 = vsyncpa [#allocation3], 1 }
 0x26b   :  { %758 = vsyncpa [#allocation6], 1 }
 0x26c   :  { %759 = vsyncpa [#allocation9], 1 }
 0x26d   :  { %760 = vsyncpa [#allocation4], 1 }

</bundles_post_ra>
